<compile_context>
chip_gen: v7x
topology: tpu7x:2x2x1
jax: 0.10.0
libtpu: 0.0.40
codegen_flags: <defaults>
</compile_context>

<pallas_src>
import jax
import jax.numpy as jnp
from jax.experimental import pallas as pl
from jax.experimental.pallas import tpu as pltpu


# ----------------------------------------------------------------------------
# Fused forward kernel (whole module, one launch, no HBM intermediates).
# ----------------------------------------------------------------------------
def _qfunction_kernel(x_ref, wc_ref, bc_ref, ga_ref, wa_ref, ba_ref, qw_ref,
                      bq_ref, o_ref):
    Cout, P = ba_ref.shape          # (channels, pixels-per-image)
    B = o_ref.shape[0]
    A = wa_ref.shape[0]

    # ---- features_extractor: Conv2d + ReLU as ONE K=9*Cin MXU contraction --
    # x_ref: (9*Cin, B*P) bf16 im2col, wc_ref: (Cout, 9*Cin) bf16.
    conv = jnp.dot(wc_ref[...], x_ref[...],
                   preferred_element_type=jnp.float32)         # (Cout, B*P) f32
    conv = jnp.maximum(conv + bc_ref[...], 0.0)                # bias + ReLU

    ba = ba_ref[...]                 # (Cout, P) f32, action-MLP bias
    qw = qw_ref[...]                 # (Cout, P) f32, Q-head weight
    bq = bq_ref[0, 0]                # scalar (SMEM), Q-head bias

    qs = []
    for b in range(B):                                   # B small & static
        # ---- action_mlp: Linear(A -> Cout*P) + ReLU --------------------
        # A scalar*tile FMAs on the VPU, on fully lane-dense (Cout, P) tiles;
        # f32 math (v5e has no bf16 VPU), bf16 storage upcast inline.
        act = ba
        for a in range(A):
            act = act + ga_ref[b, a] * wa_ref[a].astype(jnp.float32)
        act = jnp.maximum(act, 0.0)
        # ---- add + calculate_q_mlp: Linear(Cout*P -> 1) -----------------
        h = conv[:, b * P:(b + 1) * P] + act             # (Cout, P)
        qs.append(jnp.sum(h * qw, keepdims=True))        # (1, 1) full reduce
    q = jnp.concatenate(qs, axis=0) + bq                 # (B, 1)

    # TODO(synk): add a final ReLU here if MLPDefaultBlock1's Q head really
    # ends with an activation (assumed bare Linear).
    o_ref[...] = q.astype(o_ref.dtype)


# ----------------------------------------------------------------------------
# One-time repack of (in, out)-layout parameters into kernel layout:
# conv weight -> (Cout, 9*Cin) bf16, action/Q params -> (channel, pixel).
# ----------------------------------------------------------------------------
def prepare_params(params, obs_shape):
    C, H, W = obs_shape
    P = H * W
    wc = params["conv_w"]                                  # (Cout, Cin, 3, 3)
    Cout = wc.shape[0]
    A = params["act_w"].shape[0]

    # Conv weight columns ordered (tap k = kh*3 + kw, cin) to match im2col rows.
    w_conv = jnp.transpose(wc, (0, 2, 3, 1)).reshape(Cout, 9 * C)
    w_conv = w_conv.astype(jnp.bfloat16)
    b_conv = params["conv_b"].reshape(Cout, 1).astype(jnp.float32)

    # PyTorch nn.Flatten on NCHW: feature f = c*(H*W) + (h*W + w).  The kernel
    # works in (c, p) layout, so a plain reshape (F -> (Cout, P)) is exact.
    w_act = params["act_w"].reshape(A, Cout, P).astype(jnp.bfloat16)   # biggest DMA -> bf16
    b_act = params["act_b"].reshape(Cout, P).astype(jnp.float32)
    w_q = params["q_w"][:, 0].reshape(Cout, P).astype(jnp.float32)
    b_q = params["q_b"].reshape(1, 1).astype(jnp.float32)

    return {"w_conv": w_conv, "b_conv": b_conv, "w_act": w_act,
            "b_act": b_act, "w_q": w_q, "b_q": b_q}


# ----------------------------------------------------------------------------
# QFunction forward: one pallas_call for the whole module.
# ----------------------------------------------------------------------------
def qfunction_forward(observation, generalized_action, kparams):
    B, C, H, W = observation.shape
    P = H * W
    Cout = kparams["w_conv"].shape[0]
    A = kparams["w_act"].shape[0]

    # Wrapper-side im2col (pure layout plumbing, ~9*C*B*P bf16 = 36 KB here):
    # rows ordered (tap k = kh*3 + kw, cin), lane axis = (b, h, w).
    obs_p = jnp.pad(observation, ((0, 0), (0, 0), (1, 1), (1, 1)))
    taps = [obs_p[:, :, kh:kh + H, kw:kw + W]
            for kh in range(3) for kw in range(3)]            # 9 x (B, C, H, W)
    x = jnp.stack(taps, axis=0).transpose(0, 2, 1, 3, 4)      # (9, C, B, H, W)
    x = x.reshape(9 * C, B * P).astype(jnp.bfloat16)          # (9C, B*P) bf16

    grid_spec = pltpu.PrefetchScalarGridSpec(
        num_scalar_prefetch=0,
        grid=(1,),
        in_specs=[
            pl.BlockSpec((9 * C, B * P), lambda i: (0, 0)),        # im2col (bf16)
            pl.BlockSpec((Cout, 9 * C), lambda i: (0, 0)),         # conv w (bf16)
            pl.BlockSpec((Cout, 1), lambda i: (0, 0)),             # conv b
            pl.BlockSpec(memory_space=pltpu.MemorySpace.SMEM),     # ga (scalars)
            pl.BlockSpec((A, Cout, P), lambda i: (0, 0, 0)),       # act w (bf16)
            pl.BlockSpec((Cout, P), lambda i: (0, 0)),             # act b
            pl.BlockSpec((Cout, P), lambda i: (0, 0)),             # q w
            pl.BlockSpec(memory_space=pltpu.MemorySpace.SMEM),     # q b (scalar)
        ],
        out_specs=pl.BlockSpec((B, 1), lambda i: (0, 0)),
    )

    return pl.pallas_call(
        _qfunction_kernel,
        out_shape=jax.ShapeDtypeStruct((B, 1), jnp.float32),
        grid_spec=grid_spec,
        compiler_params=pltpu.CompilerParams(
            dimension_semantics=("arbitrary",)),
    )(x,
      kparams["w_conv"], kparams["b_conv"],
      generalized_action.astype(jnp.float32),
      kparams["w_act"], kparams["b_act"],
      kparams["w_q"], kparams["b_q"])


# ----------------------------------------------------------------------------
# Pure-JAX f32 reference of the assumed module semantics (for verification).
# ----------------------------------------------------------------------------
def qfunction_reference(observation, generalized_action, params):
    B = observation.shape[0]
    conv = jax.lax.conv_general_dilated(
        observation, params["conv_w"], window_strides=(1, 1), padding="SAME",
        dimension_numbers=("NCHW", "OIHW", "NCHW"))
    conv = jax.nn.relu(conv + params["conv_b"].reshape(1, -1, 1, 1))
    obs_feat = conv.reshape(B, -1)                               # NCHW flatten
    act = jax.nn.relu(generalized_action @ params["act_w"] + params["act_b"])
    return (obs_feat + act) @ params["q_w"] + params["q_b"]


# ----------------------------------------------------------------------------
# Parameter init (Linear weights in (in, out) layout; conv in OIHW).
# ----------------------------------------------------------------------------
def init_params(key, obs_shape, action_features, conv_channels=32):
    C, H, W = obs_shape
    F = conv_channels * H * W
    ks = jax.random.split(key, 6)
    s = 0.05
    return {
        "conv_w": s * jax.random.normal(ks[0], (conv_channels, C, 3, 3), jnp.float32),
        "conv_b": s * jax.random.normal(ks[1], (conv_channels,), jnp.float32),
        "act_w": s * jax.random.normal(ks[2], (action_features, F), jnp.float32),
        "act_b": s * jax.random.normal(ks[3], (F,), jnp.float32),
        "q_w": s * jax.random.normal(ks[4], (F, 1), jnp.float32),
        "q_b": s * jax.random.normal(ks[5], (1,), jnp.float32),
    }


if __name__ == "__main__":
    key = jax.random.PRNGKey(0)
    k_obs, k_act, k_par = jax.random.split(key, 3)

    B = 2
    obs_shape = (4, 16, 16)          # ImageType (C, H, W)
    action_features = 8

    observation = jax.random.normal(k_obs, (B, *obs_shape), jnp.float32)   # NCHW
    generalized_action = jax.random.normal(k_act, (B, action_features), jnp.float32)

    params = init_params(k_par, obs_shape, action_features)
    kparams = prepare_params(params, obs_shape)              # one-time repack

    fwd = jax.jit(qfunction_forward)
    q = fwd(observation, generalized_action, kparams)
    q = jax.block_until_ready(q)

    assert q.shape == (B, 1) and q.dtype == jnp.float32
    q_ref = qfunction_reference(observation, generalized_action, params)
    assert jnp.allclose(q, q_ref, rtol=5e-2, atol=5e-2), (q, q_ref)
    print("KERNEL_OK")
</pallas_src>

<mosaic_0001>
module attributes {stable_mosaic.version = 11 : i64} {
  func.func @_qfunction_kernel(%arg0: i32, %arg1: memref<36x512xbf16, #tpu.memory_space<vmem>>, %arg2: memref<32x36xbf16, #tpu.memory_space<vmem>>, %arg3: memref<32x1xf32, #tpu.memory_space<vmem>>, %arg4: memref<2x8xf32, #tpu.memory_space<smem>>, %arg5: memref<8x32x256xbf16, #tpu.memory_space<vmem>>, %arg6: memref<32x256xf32, #tpu.memory_space<vmem>>, %arg7: memref<32x256xf32, #tpu.memory_space<vmem>>, %arg8: memref<1x1xf32, #tpu.memory_space<smem>>, %arg9: memref<2x1xf32, #tpu.memory_space<vmem>>) attributes {dimension_semantics = [#tpu.dimension_semantics<arbitrary>], iteration_bounds = array<i64: 1>, scalar_prefetch = 0 : i64, scratch_operands = 0 : i64, tpu.core_type = #tpu.core_type<tc>, window_params = [{pipeline_mode = #tpu.pipeline_mode<synchronous>, transform_indices = @transform_0, window_bounds = array<i64: 36, 512>}, {pipeline_mode = #tpu.pipeline_mode<synchronous>, transform_indices = @transform_1, window_bounds = array<i64: 32, 36>}, {pipeline_mode = #tpu.pipeline_mode<synchronous>, transform_indices = @transform_2, window_bounds = array<i64: 32, 1>}, {transform_indices = @transform_3, window_bounds = array<i64: 2, 8>}, {pipeline_mode = #tpu.pipeline_mode<synchronous>, transform_indices = @transform_4, window_bounds = array<i64: 8, 32, 256>}, {pipeline_mode = #tpu.pipeline_mode<synchronous>, transform_indices = @transform_5, window_bounds = array<i64: 32, 256>}, {pipeline_mode = #tpu.pipeline_mode<synchronous>, transform_indices = @transform_6, window_bounds = array<i64: 32, 256>}, {transform_indices = @transform_7, window_bounds = array<i64: 1, 1>}, {pipeline_mode = #tpu.pipeline_mode<synchronous>, transform_indices = @transform_8, window_bounds = array<i64: 2, 1>}]} {
    %c0 = arith.constant 0 : index
    %c0_0 = arith.constant 0 : index
    %0 = vector.load %arg2[%c0, %c0_0] : memref<32x36xbf16, #tpu.memory_space<vmem>>, vector<32x36xbf16>
    %c0_1 = arith.constant 0 : index
    %c0_2 = arith.constant 0 : index
    %1 = vector.load %arg1[%c0_1, %c0_2] : memref<36x512xbf16, #tpu.memory_space<vmem>>, vector<36x512xbf16>
    %cst = arith.constant dense<0.000000e+00> : vector<32x512xf32>
    %2 = tpu.matmul %0, %1, %cst {dimension_numbers = #tpu.dot_dimension_numbers<[1], [0], [0], [1], [0, 0, 1, 1], [], []>} : vector<32x36xbf16>, vector<36x512xbf16>, vector<32x512xf32> -> vector<32x512xf32>
    %c0_3 = arith.constant 0 : index
    %c0_4 = arith.constant 0 : index
    %3 = vector.load %arg3[%c0_3, %c0_4] : memref<32x1xf32, #tpu.memory_space<vmem>>, vector<32x1xf32>
    %4 = vector.broadcast %3 : vector<32x1xf32> to vector<32x512xf32>
    %5 = arith.addf %2, %4 : vector<32x512xf32>
    %cst_5 = arith.constant 0.000000e+00 : f32
    %6 = vector.broadcast %cst_5 : f32 to vector<32x512xf32>
    %7 = arith.maximumf %5, %6 : vector<32x512xf32>
    %c0_6 = arith.constant 0 : index
    %c0_7 = arith.constant 0 : index
    %8 = vector.load %arg6[%c0_6, %c0_7] : memref<32x256xf32, #tpu.memory_space<vmem>>, vector<32x256xf32>
    %c0_8 = arith.constant 0 : index
    %c0_9 = arith.constant 0 : index
    %9 = vector.load %arg7[%c0_8, %c0_9] : memref<32x256xf32, #tpu.memory_space<vmem>>, vector<32x256xf32>
    %c0_10 = arith.constant 0 : index
    %c0_11 = arith.constant 0 : index
    %10 = memref.load %arg8[%c0_10, %c0_11] : memref<1x1xf32, #tpu.memory_space<smem>>
    %c0_12 = arith.constant 0 : index
    %c0_13 = arith.constant 0 : index
    %11 = memref.load %arg4[%c0_12, %c0_13] : memref<2x8xf32, #tpu.memory_space<smem>>
    %c0_14 = arith.constant 0 : index
    %c0_15 = arith.constant 0 : index
    %c0_16 = arith.constant 0 : index
    %12 = vector.load %arg5[%c0_14, %c0_15, %c0_16] : memref<8x32x256xbf16, #tpu.memory_space<vmem>>, vector<1x32x256xbf16>
    %13 = vector.shape_cast %12 : vector<1x32x256xbf16> to vector<32x256xbf16>
    %14 = arith.extf %13 : vector<32x256xbf16> to vector<32x256xf32>
    %15 = vector.broadcast %11 : f32 to vector<32x256xf32>
    %16 = arith.mulf %15, %14 : vector<32x256xf32>
    %17 = arith.addf %8, %16 : vector<32x256xf32>
    %c0_17 = arith.constant 0 : index
    %c1 = arith.constant 1 : index
    %18 = memref.load %arg4[%c0_17, %c1] : memref<2x8xf32, #tpu.memory_space<smem>>
    %c1_18 = arith.constant 1 : index
    %c0_19 = arith.constant 0 : index
    %c0_20 = arith.constant 0 : index
    %19 = vector.load %arg5[%c1_18, %c0_19, %c0_20] : memref<8x32x256xbf16, #tpu.memory_space<vmem>>, vector<1x32x256xbf16>
    %20 = vector.shape_cast %19 : vector<1x32x256xbf16> to vector<32x256xbf16>
    %21 = arith.extf %20 : vector<32x256xbf16> to vector<32x256xf32>
    %22 = vector.broadcast %18 : f32 to vector<32x256xf32>
    %23 = arith.mulf %22, %21 : vector<32x256xf32>
    %24 = arith.addf %17, %23 : vector<32x256xf32>
    %c0_21 = arith.constant 0 : index
    %c2 = arith.constant 2 : index
    %25 = memref.load %arg4[%c0_21, %c2] : memref<2x8xf32, #tpu.memory_space<smem>>
    %c2_22 = arith.constant 2 : index
    %c0_23 = arith.constant 0 : index
    %c0_24 = arith.constant 0 : index
    %26 = vector.load %arg5[%c2_22, %c0_23, %c0_24] : memref<8x32x256xbf16, #tpu.memory_space<vmem>>, vector<1x32x256xbf16>
    %27 = vector.shape_cast %26 : vector<1x32x256xbf16> to vector<32x256xbf16>
    %28 = arith.extf %27 : vector<32x256xbf16> to vector<32x256xf32>
    %29 = vector.broadcast %25 : f32 to vector<32x256xf32>
    %30 = arith.mulf %29, %28 : vector<32x256xf32>
    %31 = arith.addf %24, %30 : vector<32x256xf32>
    %c0_25 = arith.constant 0 : index
    %c3 = arith.constant 3 : index
    %32 = memref.load %arg4[%c0_25, %c3] : memref<2x8xf32, #tpu.memory_space<smem>>
    %c3_26 = arith.constant 3 : index
    %c0_27 = arith.constant 0 : index
    %c0_28 = arith.constant 0 : index
    %33 = vector.load %arg5[%c3_26, %c0_27, %c0_28] : memref<8x32x256xbf16, #tpu.memory_space<vmem>>, vector<1x32x256xbf16>
    %34 = vector.shape_cast %33 : vector<1x32x256xbf16> to vector<32x256xbf16>
    %35 = arith.extf %34 : vector<32x256xbf16> to vector<32x256xf32>
    %36 = vector.broadcast %32 : f32 to vector<32x256xf32>
    %37 = arith.mulf %36, %35 : vector<32x256xf32>
    %38 = arith.addf %31, %37 : vector<32x256xf32>
    %c0_29 = arith.constant 0 : index
    %c4 = arith.constant 4 : index
    %39 = memref.load %arg4[%c0_29, %c4] : memref<2x8xf32, #tpu.memory_space<smem>>
    %c4_30 = arith.constant 4 : index
    %c0_31 = arith.constant 0 : index
    %c0_32 = arith.constant 0 : index
    %40 = vector.load %arg5[%c4_30, %c0_31, %c0_32] : memref<8x32x256xbf16, #tpu.memory_space<vmem>>, vector<1x32x256xbf16>
    %41 = vector.shape_cast %40 : vector<1x32x256xbf16> to vector<32x256xbf16>
    %42 = arith.extf %41 : vector<32x256xbf16> to vector<32x256xf32>
    %43 = vector.broadcast %39 : f32 to vector<32x256xf32>
    %44 = arith.mulf %43, %42 : vector<32x256xf32>
    %45 = arith.addf %38, %44 : vector<32x256xf32>
    %c0_33 = arith.constant 0 : index
    %c5 = arith.constant 5 : index
    %46 = memref.load %arg4[%c0_33, %c5] : memref<2x8xf32, #tpu.memory_space<smem>>
    %c5_34 = arith.constant 5 : index
    %c0_35 = arith.constant 0 : index
    %c0_36 = arith.constant 0 : index
    %47 = vector.load %arg5[%c5_34, %c0_35, %c0_36] : memref<8x32x256xbf16, #tpu.memory_space<vmem>>, vector<1x32x256xbf16>
    %48 = vector.shape_cast %47 : vector<1x32x256xbf16> to vector<32x256xbf16>
    %49 = arith.extf %48 : vector<32x256xbf16> to vector<32x256xf32>
    %50 = vector.broadcast %46 : f32 to vector<32x256xf32>
    %51 = arith.mulf %50, %49 : vector<32x256xf32>
    %52 = arith.addf %45, %51 : vector<32x256xf32>
    %c0_37 = arith.constant 0 : index
    %c6 = arith.constant 6 : index
    %53 = memref.load %arg4[%c0_37, %c6] : memref<2x8xf32, #tpu.memory_space<smem>>
    %c6_38 = arith.constant 6 : index
    %c0_39 = arith.constant 0 : index
    %c0_40 = arith.constant 0 : index
    %54 = vector.load %arg5[%c6_38, %c0_39, %c0_40] : memref<8x32x256xbf16, #tpu.memory_space<vmem>>, vector<1x32x256xbf16>
    %55 = vector.shape_cast %54 : vector<1x32x256xbf16> to vector<32x256xbf16>
    %56 = arith.extf %55 : vector<32x256xbf16> to vector<32x256xf32>
    %57 = vector.broadcast %53 : f32 to vector<32x256xf32>
    %58 = arith.mulf %57, %56 : vector<32x256xf32>
    %59 = arith.addf %52, %58 : vector<32x256xf32>
    %c0_41 = arith.constant 0 : index
    %c7 = arith.constant 7 : index
    %60 = memref.load %arg4[%c0_41, %c7] : memref<2x8xf32, #tpu.memory_space<smem>>
    %c7_42 = arith.constant 7 : index
    %c0_43 = arith.constant 0 : index
    %c0_44 = arith.constant 0 : index
    %61 = vector.load %arg5[%c7_42, %c0_43, %c0_44] : memref<8x32x256xbf16, #tpu.memory_space<vmem>>, vector<1x32x256xbf16>
    %62 = vector.shape_cast %61 : vector<1x32x256xbf16> to vector<32x256xbf16>
    %63 = arith.extf %62 : vector<32x256xbf16> to vector<32x256xf32>
    %64 = vector.broadcast %60 : f32 to vector<32x256xf32>
    %65 = arith.mulf %64, %63 : vector<32x256xf32>
    %66 = arith.addf %59, %65 : vector<32x256xf32>
    %cst_45 = arith.constant 0.000000e+00 : f32
    %67 = vector.broadcast %cst_45 : f32 to vector<32x256xf32>
    %68 = arith.maximumf %66, %67 : vector<32x256xf32>
    %69 = vector.extract_strided_slice %7 {offsets = [0, 0], sizes = [32, 256], strides = [1, 1]} : vector<32x512xf32> to vector<32x256xf32>
    %70 = arith.addf %69, %68 : vector<32x256xf32>
    %71 = arith.mulf %70, %9 : vector<32x256xf32>
    %72 = vector.shape_cast %71 : vector<32x256xf32> to vector<1x32x256xf32>
    %cst_46 = arith.constant dense<0.000000e+00> : vector<1xf32>
    %73 = vector.multi_reduction <add>, %72, %cst_46 [1, 2] : vector<1x32x256xf32> to vector<1xf32>
    %74 = vector.shape_cast %73 : vector<1xf32> to vector<1x1x1xf32>
    %75 = vector.extract %74[0, 0, 0] : f32 from vector<1x1x1xf32>
    %76 = vector.broadcast %75 : f32 to vector<1x1xf32>
    %c1_47 = arith.constant 1 : index
    %c0_48 = arith.constant 0 : index
    %77 = memref.load %arg4[%c1_47, %c0_48] : memref<2x8xf32, #tpu.memory_space<smem>>
    %c0_49 = arith.constant 0 : index
    %c0_50 = arith.constant 0 : index
    %c0_51 = arith.constant 0 : index
    %78 = vector.load %arg5[%c0_49, %c0_50, %c0_51] : memref<8x32x256xbf16, #tpu.memory_space<vmem>>, vector<1x32x256xbf16>
    %79 = vector.shape_cast %78 : vector<1x32x256xbf16> to vector<32x256xbf16>
    %80 = arith.extf %79 : vector<32x256xbf16> to vector<32x256xf32>
    %81 = vector.broadcast %77 : f32 to vector<32x256xf32>
    %82 = arith.mulf %81, %80 : vector<32x256xf32>
    %83 = arith.addf %8, %82 : vector<32x256xf32>
    %c1_52 = arith.constant 1 : index
    %c1_53 = arith.constant 1 : index
    %84 = memref.load %arg4[%c1_52, %c1_53] : memref<2x8xf32, #tpu.memory_space<smem>>
    %c1_54 = arith.constant 1 : index
    %c0_55 = arith.constant 0 : index
    %c0_56 = arith.constant 0 : index
    %85 = vector.load %arg5[%c1_54, %c0_55, %c0_56] : memref<8x32x256xbf16, #tpu.memory_space<vmem>>, vector<1x32x256xbf16>
    %86 = vector.shape_cast %85 : vector<1x32x256xbf16> to vector<32x256xbf16>
    %87 = arith.extf %86 : vector<32x256xbf16> to vector<32x256xf32>
    %88 = vector.broadcast %84 : f32 to vector<32x256xf32>
    %89 = arith.mulf %88, %87 : vector<32x256xf32>
    %90 = arith.addf %83, %89 : vector<32x256xf32>
    %c1_57 = arith.constant 1 : index
    %c2_58 = arith.constant 2 : index
    %91 = memref.load %arg4[%c1_57, %c2_58] : memref<2x8xf32, #tpu.memory_space<smem>>
    %c2_59 = arith.constant 2 : index
    %c0_60 = arith.constant 0 : index
    %c0_61 = arith.constant 0 : index
    %92 = vector.load %arg5[%c2_59, %c0_60, %c0_61] : memref<8x32x256xbf16, #tpu.memory_space<vmem>>, vector<1x32x256xbf16>
    %93 = vector.shape_cast %92 : vector<1x32x256xbf16> to vector<32x256xbf16>
    %94 = arith.extf %93 : vector<32x256xbf16> to vector<32x256xf32>
    %95 = vector.broadcast %91 : f32 to vector<32x256xf32>
    %96 = arith.mulf %95, %94 : vector<32x256xf32>
    %97 = arith.addf %90, %96 : vector<32x256xf32>
    %c1_62 = arith.constant 1 : index
    %c3_63 = arith.constant 3 : index
    %98 = memref.load %arg4[%c1_62, %c3_63] : memref<2x8xf32, #tpu.memory_space<smem>>
    %c3_64 = arith.constant 3 : index
    %c0_65 = arith.constant 0 : index
    %c0_66 = arith.constant 0 : index
    %99 = vector.load %arg5[%c3_64, %c0_65, %c0_66] : memref<8x32x256xbf16, #tpu.memory_space<vmem>>, vector<1x32x256xbf16>
    %100 = vector.shape_cast %99 : vector<1x32x256xbf16> to vector<32x256xbf16>
    %101 = arith.extf %100 : vector<32x256xbf16> to vector<32x256xf32>
    %102 = vector.broadcast %98 : f32 to vector<32x256xf32>
    %103 = arith.mulf %102, %101 : vector<32x256xf32>
    %104 = arith.addf %97, %103 : vector<32x256xf32>
    %c1_67 = arith.constant 1 : index
    %c4_68 = arith.constant 4 : index
    %105 = memref.load %arg4[%c1_67, %c4_68] : memref<2x8xf32, #tpu.memory_space<smem>>
    %c4_69 = arith.constant 4 : index
    %c0_70 = arith.constant 0 : index
    %c0_71 = arith.constant 0 : index
    %106 = vector.load %arg5[%c4_69, %c0_70, %c0_71] : memref<8x32x256xbf16, #tpu.memory_space<vmem>>, vector<1x32x256xbf16>
    %107 = vector.shape_cast %106 : vector<1x32x256xbf16> to vector<32x256xbf16>
    %108 = arith.extf %107 : vector<32x256xbf16> to vector<32x256xf32>
    %109 = vector.broadcast %105 : f32 to vector<32x256xf32>
    %110 = arith.mulf %109, %108 : vector<32x256xf32>
    %111 = arith.addf %104, %110 : vector<32x256xf32>
    %c1_72 = arith.constant 1 : index
    %c5_73 = arith.constant 5 : index
    %112 = memref.load %arg4[%c1_72, %c5_73] : memref<2x8xf32, #tpu.memory_space<smem>>
    %c5_74 = arith.constant 5 : index
    %c0_75 = arith.constant 0 : index
    %c0_76 = arith.constant 0 : index
    %113 = vector.load %arg5[%c5_74, %c0_75, %c0_76] : memref<8x32x256xbf16, #tpu.memory_space<vmem>>, vector<1x32x256xbf16>
    %114 = vector.shape_cast %113 : vector<1x32x256xbf16> to vector<32x256xbf16>
    %115 = arith.extf %114 : vector<32x256xbf16> to vector<32x256xf32>
    %116 = vector.broadcast %112 : f32 to vector<32x256xf32>
    %117 = arith.mulf %116, %115 : vector<32x256xf32>
    %118 = arith.addf %111, %117 : vector<32x256xf32>
    %c1_77 = arith.constant 1 : index
    %c6_78 = arith.constant 6 : index
    %119 = memref.load %arg4[%c1_77, %c6_78] : memref<2x8xf32, #tpu.memory_space<smem>>
    %c6_79 = arith.constant 6 : index
    %c0_80 = arith.constant 0 : index
    %c0_81 = arith.constant 0 : index
    %120 = vector.load %arg5[%c6_79, %c0_80, %c0_81] : memref<8x32x256xbf16, #tpu.memory_space<vmem>>, vector<1x32x256xbf16>
    %121 = vector.shape_cast %120 : vector<1x32x256xbf16> to vector<32x256xbf16>
    %122 = arith.extf %121 : vector<32x256xbf16> to vector<32x256xf32>
    %123 = vector.broadcast %119 : f32 to vector<32x256xf32>
    %124 = arith.mulf %123, %122 : vector<32x256xf32>
    %125 = arith.addf %118, %124 : vector<32x256xf32>
    %c1_82 = arith.constant 1 : index
    %c7_83 = arith.constant 7 : index
    %126 = memref.load %arg4[%c1_82, %c7_83] : memref<2x8xf32, #tpu.memory_space<smem>>
    %c7_84 = arith.constant 7 : index
    %c0_85 = arith.constant 0 : index
    %c0_86 = arith.constant 0 : index
    %127 = vector.load %arg5[%c7_84, %c0_85, %c0_86] : memref<8x32x256xbf16, #tpu.memory_space<vmem>>, vector<1x32x256xbf16>
    %128 = vector.shape_cast %127 : vector<1x32x256xbf16> to vector<32x256xbf16>
    %129 = arith.extf %128 : vector<32x256xbf16> to vector<32x256xf32>
    %130 = vector.broadcast %126 : f32 to vector<32x256xf32>
    %131 = arith.mulf %130, %129 : vector<32x256xf32>
    %132 = arith.addf %125, %131 : vector<32x256xf32>
    %cst_87 = arith.constant 0.000000e+00 : f32
    %133 = vector.broadcast %cst_87 : f32 to vector<32x256xf32>
    %134 = arith.maximumf %132, %133 : vector<32x256xf32>
    %135 = vector.extract_strided_slice %7 {offsets = [0, 256], sizes = [32, 256], strides = [1, 1]} : vector<32x512xf32> to vector<32x256xf32>
    %136 = arith.addf %135, %134 : vector<32x256xf32>
    %137 = arith.mulf %136, %9 : vector<32x256xf32>
    %138 = vector.shape_cast %137 : vector<32x256xf32> to vector<1x32x256xf32>
    %cst_88 = arith.constant dense<0.000000e+00> : vector<1xf32>
    %139 = vector.multi_reduction <add>, %138, %cst_88 [1, 2] : vector<1x32x256xf32> to vector<1xf32>
    %140 = vector.shape_cast %139 : vector<1xf32> to vector<1x1x1xf32>
    %141 = vector.extract %140[0, 0, 0] : f32 from vector<1x1x1xf32>
    %142 = vector.broadcast %141 : f32 to vector<1x1xf32>
    %143 = tpu.concatenate %76, %142 in 0 : vector<1x1xf32>, vector<1x1xf32> -> vector<2x1xf32>
    %144 = vector.broadcast %10 : f32 to vector<2x1xf32>
    %145 = arith.addf %143, %144 : vector<2x1xf32>
    %c0_89 = arith.constant 0 : index
    %c0_90 = arith.constant 0 : index
    %146 = vector.load %arg9[%c0_89, %c0_90] : memref<2x1xf32, #tpu.memory_space<vmem>>, vector<2x1xf32>
    tpu.vector_store %arg9[%c0_89, %c0_90], %145 {strides = array<i32>} : memref<2x1xf32, #tpu.memory_space<vmem>>, vector<2x1xf32>,
    return
  }
  func.func @transform_0(%arg0: i32) -> (i32, i32) {
    %c0_i32 = arith.constant 0 : i32
    %c0_i32_0 = arith.constant 0 : i32
    %c0_i32_1 = arith.constant 0 : i32
    return %c0_i32, %c0_i32_0 : i32, i32
  }
  func.func @transform_1(%arg0: i32) -> (i32, i32) {
    %c0_i32 = arith.constant 0 : i32
    %c0_i32_0 = arith.constant 0 : i32
    %c0_i32_1 = arith.constant 0 : i32
    return %c0_i32, %c0_i32_0 : i32, i32
  }
  func.func @transform_2(%arg0: i32) -> (i32, i32) {
    %c0_i32 = arith.constant 0 : i32
    %c0_i32_0 = arith.constant 0 : i32
    %c0_i32_1 = arith.constant 0 : i32
    return %c0_i32, %c0_i32_0 : i32, i32
  }
  func.func @transform_3(%arg0: i32) -> (i32, i32) {
    %c0_i32 = arith.constant 0 : i32
    %c0_i32_0 = arith.constant 0 : i32
    %c0_i32_1 = arith.constant 0 : i32
    return %c0_i32, %c0_i32_0 : i32, i32
  }
  func.func @transform_4(%arg0: i32) -> (i32, i32, i32) {
    %c0_i32 = arith.constant 0 : i32
    %c0_i32_0 = arith.constant 0 : i32
    %c0_i32_1 = arith.constant 0 : i32
    %c0_i32_2 = arith.constant 0 : i32
    return %c0_i32, %c0_i32_0, %c0_i32_1 : i32, i32, i32
  }
  func.func @transform_5(%arg0: i32) -> (i32, i32) {
    %c0_i32 = arith.constant 0 : i32
    %c0_i32_0 = arith.constant 0 : i32
    %c0_i32_1 = arith.constant 0 : i32
    return %c0_i32, %c0_i32_0 : i32, i32
  }
  func.func @transform_6(%arg0: i32) -> (i32, i32) {
    %c0_i32 = arith.constant 0 : i32
    %c0_i32_0 = arith.constant 0 : i32
    %c0_i32_1 = arith.constant 0 : i32
    return %c0_i32, %c0_i32_0 : i32, i32
  }
  func.func @transform_7(%arg0: i32) -> (i32, i32) {
    %c0_i32 = arith.constant 0 : i32
    %c0_i32_0 = arith.constant 0 : i32
    %c0_i32_1 = arith.constant 0 : i32
    return %c0_i32, %c0_i32_0 : i32, i32
  }
  func.func @transform_8(%arg0: i32) -> (i32, i32) {
    %c0_i32 = arith.constant 0 : i32
    %c0_i32_0 = arith.constant 0 : i32
    %c0_i32_1 = arith.constant 0 : i32
    return %c0_i32, %c0_i32_0 : i32, i32
  }
}

</mosaic_0001>

<bundles_post_ra>
// kernel: qfunction_forward.1
= control target key start
LH: loop header
LB: loop body
LE: loop exit
PB: predicated region body
PF: predicated region fallthrough
CT: control target
= control target key end

     0   :  { %14 = vsyncpa [#allocation4], 0  ;;  %s1529_s0 = inlined_call_operand.vmem [shape: bf16[36,512], index: 0, kind: input, shape index: {}]   ;;  %s1530_s1 = inlined_call_operand.vmem [shape: bf16[32,36], index: 1, kind: input, shape index: {}]   ;;  %s1531_s2 = inlined_call_operand.vmem [shape: f32[32,1], index: 2, kind: input, shape index: {}]   ;;  %s1532_s3 = inlined_call_operand.vmem [shape: f32[2,8], index: 3, kind: input, shape index: {}]   ;;  %s1533_s4 = inlined_call_operand.vmem [shape: bf16[8,32,256], index: 4, kind: input, shape index: {}]   ;;  %s1534_s5 = inlined_call_operand.vmem [shape: f32[32,256], index: 5, kind: input, shape index: {}]   ;;  %s1535_s6 = inlined_call_operand.vmem [shape: f32[32,256], index: 6, kind: input, shape index: {}]   ;;  %s1536_s7 = inlined_call_operand.<no memory space> [shape: f32[1,1], index: 7, kind: input, shape index: {}]   ;;  %s1537_s8 = inlined_call_operand.vmem [shape: f32[2,1], index: 8, kind: output, shape index: {}]  }
   0x1   :  { %s27_s29 = sshll.u32 %s1532_s3, 4  ;;  %s28_s29 = int_to_ptr.vmem [resolvable:$true] %s27_s29 }
   0x2   :  { %s874_s30 = scalar_lea.vmem %s28_s29, 32  ;;  %p879_p1 = scmp.lt.s32.totalorder %s28_s29, %s28_s29 }
   0x3   :  { %p875_p0 = scmp.ne.s32.totalorder %s28_s29, %s874_s30  ;;  %p880_p2 = scmp.lt.s32.totalorder %s874_s30, %s874_s30 }
   0x5   :  { %p881_p3 = por %p880_p2, %p879_p1 }
   0x7   :  { %p882_p4 = pnand %p881_p3, %p875_p0 }
   0x9   :  { %885 = shalt.err (!%p882_p4)
}
   0xa   :  { %s888_s9 = smov [#allocation3]  }
   0xb   :  { %30 = dma.vmem_to_smem %s28_s29, 32, %s888_s9, [#allocation4]  }
   0xc   :  { %886 = dma.done.wait [#allocation4], 32  }
   0xd   :  { %887 = vsyncadd [#allocation4], 4294967264 }
   0xe   :  { %42 = sfence }
   0xf   :  { %v856_v0 = vld [vmem:[%s1529_s0 + $0x4] ss:$16 sps:$4 sm:$0xff]   ;;  %v858_v1 = vld [vmem:[%s1529_s0 + $0xc] ss:$16 sps:$4 sm:$0xff]   ;;  %v889_v2 = vmov 0   ;;  %vm149_vm0 = vcmask 1041408  }
  0x10   :  { %194 = vmatprep.mubr.bf16.mxu0 %v889_v2  ;;  %247 = vmatprep.mubr.bf16.mxu1 %v889_v2  ;;  %v860_v3 = vld [vmem:[%s1529_s0] ss:$16 sps:$4 sm:$0xff]   ;;  %v861_v4 = vld [vmem:[%s1529_s0 + $0x8] ss:$16 sps:$4 sm:$0xff]   ;;  %v862_v5 = vld [vmem:[%s1529_s0 + $0x24] ss:$16 sps:$4 sm:$0xff]  }
  0x11   :  { %162 = vmatprep.subr.bf16.mxu0 %v856_v0  ;;  %854 = vset.pattern.permute.xlu0 %v889_v2  ;;  %v864_v6 = vld [vmem:[%s1529_s0 + $0x2c] ss:$16 sps:$4 sm:$0xff]   ;;  %v866_v7 = vld [vmem:[%s1529_s0 + $0x20] ss:$16 sps:$4 sm:$0xff]   ;;  %v867_v8 = vld [vmem:[%s1529_s0 + $0x28] ss:$16 sps:$4 sm:$0xff]  }
  0x12   :  { %215 = vmatprep.subr.bf16.mxu1 %v858_v1  ;;  %855 = vset.pattern.permute.xlu1 %v889_v2  ;;  %v56_v9 = vld [vmem:[%s1529_s0 + $0x40] sm:$0x33]  ;;  %v57_v10 = vld [vmem:[%s1529_s0 + $0x48] sm:$0x33]  ;;  %v60_v16 = vld [vmem:[%s1531_s2 + $0x10] sm:$0xff]  ;;  %vm142_vm1 = vcmask 293888  }
  0x13   :  { %163 = vmatpush1.bf16.msra.mxu0 %v860_v3  ;;  %216 = vmatpush1.bf16.msra.mxu1 %v861_v4  ;;  %v796_v11 = vcombine.high %v56_v9, %v56_v9  ;;  %v798_v12 = vcombine.high %v57_v10, %v57_v10  ;;  %v795_v13 = vcombine.low %v56_v9, %v56_v9  ;;  %v58_v15 = vld [vmem:[%s1531_s2] sm:$0xff]  ;;  %v59_v20 = vld [vmem:[%s1531_s2 + $0x8] sm:$0xff]  ;;  %v61_v21 = vld [vmem:[%s1531_s2 + $0x18] sm:$0xff]  ;;  %s301_s17 = sld [smem:[#allocation3]]  ;;  %s805_s2 = sld [smem:[#allocation3 + $0x1]]  ;;  %vm774_vm2 = vcmask 1040384  }
  0x14   :  { %164 = vmatprep.subr.bf16.mxu0 %v862_v5  ;;  %217 = vmatprep.subr.bf16.mxu1 %v864_v6  ;;  %v797_v14 = vcombine.low %v57_v10, %v57_v10  ;;  %v872_v19 = vld [vmem:[%s1530_s1] sm:$0xff]   ;;  %v873_v22 = vld [vmem:[%s1530_s1 + $0x8] sm:$0xff]   ;;  %s840_s18 = sld [smem:[#allocation3 + $0x80]]  ;;  %s841_s21 = sld [smem:[#allocation3 + $0x81]]  ;;  %vm778_vm3 = vcmask 1024  }
  0x15   :  { %v151_v17 = vsel %vm149_vm0, %v795_v13, 0  ;;  %64 = vperm.xlu0 %854, %v58_v15   ;;  %74 = vperm.xlu1 %855, %v60_v16   ;;  %v993_v23 = vld [vmem:[%s1533_s4] sm:$0xff]  ;;  %s810_s1 = sld [smem:[#allocation3 + $0x2]]  ;;  %s815_s29 = sld [smem:[#allocation3 + $0x3]]  ;;  %v285_v1 = vld [vmem:[%s1534_s5 + $0x8] sm:$0xff] }
  0x16   :  { %v157_v18 = vsel %vm149_vm0, %v797_v14, 0  ;;  %v306_v24 = vunpack.c.l.bf16 %v993_v23  ;;  %v1001_v26 = vld [vmem:[%s1533_s4 + $0x20] sm:$0xff]  ;;  %s842_s24 = sld [smem:[#allocation3 + $0x82]]  ;;  %s843_s30 = sld [smem:[#allocation3 + $0x83]]  ;;  %v307_v51 = vunpack.c.h.bf16 %v993_v23  ;;  %v1079_v10 = vld [vmem:[%s1533_s4 + $0x8] sm:$0xff] }
  0x17   :  { %165 = vmatpush1.bf16.msra.mxu0 %v866_v7  ;;  %218 = vmatpush1.bf16.msra.mxu1 %v867_v8  ;;  %v337_v29 = vunpack.c.l.bf16 %v1001_v26  ;;  %v284_v30 = vld [vmem:[%s1534_s5] sm:$0xff]  ;;  %s820_s0 = sld [smem:[#allocation3 + $0x4]]  ;;  %s825_s3 = sld [smem:[#allocation3 + $0x5]]  ;;  %v338_v61 = vunpack.c.h.bf16 %v1001_v26 }
  0x18   :  { %799 = vmatprep.subr.msk.bf16.mxu0 %vm149_vm0, %v796_v11  ;;  %802 = vmatprep.subr.msk.bf16.mxu1 %vm149_vm0, %v798_v12  ;;  %v1015_v32 = vld [vmem:[%s1533_s4 + $0x40] sm:$0xff]  ;;  %s844_s11 = sld [smem:[#allocation3 + $0x84]]  ;;  %s845_s14 = sld [smem:[#allocation3 + $0x85]] }
  0x19   :  { %69 = vperm.xlu0 %854, %v59_v20   ;;  %79 = vperm.xlu1 %855, %v61_v21   ;;  %v996_v25 = vstv %s301_s17  ;;  %v1010_v31 = vstv %s805_s2  ;;  %v368_v37 = vunpack.c.l.bf16 %v1015_v32  ;;  %v1027_v39 = vld [vmem:[%s1533_s4 + $0x60] sm:$0xff]  ;;  %s830_s17 = sld [smem:[#allocation3 + $0x6]]  ;;  %s835_s22 = sld [smem:[#allocation3 + $0x7]]  ;;  %v369_v9 = vunpack.c.h.bf16 %v1015_v32 }
  0x1a   :  { %v1003_v27 = vstv %s840_s18  ;;  %v315_v28 = vmul.f32 %v996_v25, %v306_v24  ;;  %v1018_v34 = vstv %s841_s21  ;;  %v346_v36 = vmul.f32 %v1010_v31, %v337_v29  ;;  %v1039_v47 = vld [vmem:[%s1533_s4 + $0x80] sm:$0xff]  ;;  %s846_s18 = sld [smem:[#allocation3 + $0x86]]  ;;  %s847_s23 = sld [smem:[#allocation3 + $0x87]] }
  0x1b   :  { %167 = vmatpush1.bf16.msra.mxu0 %v151_v17  ;;  %220 = vmatpush1.bf16.msra.mxu1 %v157_v18  ;;  %v591_v33 = vmul.f32 %v1003_v27, %v306_v24  ;;  %v1022_v38 = vstv %s810_s1  ;;  %v609_v41 = vmul.f32 %v1018_v34, %v337_v29  ;;  %v399_v45 = vunpack.c.l.bf16 %v1027_v39  ;;  %v1052_v56 = vld [vmem:[%s1533_s4 + $0xa0] sm:$0xff]  ;;  %v1100_v24 = vld [vmem:[%s1533_s4 + $0x28] sm:$0xff] }
  0x1c   :  { %v323_v35 = vadd.f32 %v315_v28, %v284_v30  ;;  %v1030_v42 = vstv %s842_s24  ;;  %v377_v44 = vmul.f32 %v1022_v38, %v368_v37  ;;  %v1034_v46 = vstv %s815_s29  ;;  %v1069_v3 = vld [vmem:[%s1533_s4 + $0xc0] sm:$0xff] }
  0x1d   :  { %v599_v40 = vadd.f32 %v591_v33, %v284_v30  ;;  %v627_v49 = vmul.f32 %v1030_v42, %v368_v37  ;;  %v1042_v50 = vstv %s843_s30  ;;  %v408_v53 = vmul.f32 %v1034_v46, %v399_v45  ;;  %v1088_v15 = vld [vmem:[%s1533_s4 + $0xe0] sm:$0xff] }
  0x1e   :  { %800 = vmatmul.mubr.msk.bf16.vlgmr.msra.gmra.mrb[0].mxu0 %vm142_vm1, %v872_v19  ;;  %803 = vmatmul.mubr.msk.bf16.vlgmr.msra.gmra.mrb[0].mxu1 %vm142_vm1, %v872_v19  ;;  %v354_v43 = vadd.f32 %v346_v36, %v323_v35  ;;  %v430_v54 = vunpack.c.l.bf16 %v1039_v47  ;;  %v1047_v55 = vstv %s820_s0  ;;  %v645_v58 = vmul.f32 %v1042_v50, %v399_v45 }
  0x1f   :  { %204 = vmatprep.mubr.bf16.mxu0 %v889_v2  ;;  %257 = vmatprep.mubr.bf16.mxu1 %v889_v2  ;;  %v617_v48 = vadd.f32 %v609_v41, %v599_v40  ;;  %v1055_v59 = vstv %s844_s11  ;;  %v316_v60 = vmul.f32 %v996_v25, %v307_v51  ;;  %v461_v0 = vunpack.c.l.bf16 %v1052_v56 }
  0x20   :  { %v385_v52 = vadd.f32 %v377_v44, %v354_v43  ;;  %v439_v63 = vmul.f32 %v1047_v55, %v430_v54  ;;  %v1064_v2 = vstv %s825_s3  ;;  %v663_v5 = vmul.f32 %v1055_v59, %v430_v54 }
  0x21   :  { %v635_v57 = vadd.f32 %v627_v49, %v617_v48  ;;  %v1072_v6 = vstv %s845_s14  ;;  %v324_v7 = vadd.f32 %v316_v60, %v285_v1  ;;  %v347_v8 = vmul.f32 %v1010_v31, %v338_v61  ;;  %v286_v48 = vld [vmem:[%s1534_s5 + $0x10] sm:$0xff]  ;;  %v1121_v49 = vld [vmem:[%s1533_s4 + $0x48] sm:$0xff] }
  0x22   :  { %v416_v62 = vadd.f32 %v408_v53, %v385_v52  ;;  %v470_v12 = vmul.f32 %v1064_v2, %v461_v0  ;;  %v492_v13 = vunpack.c.l.bf16 %v1069_v3  ;;  %v1083_v14 = vstv %s830_s17 }
  0x23   :  { %v653_v4 = vadd.f32 %v645_v58, %v635_v57  ;;  %v592_v16 = vmul.f32 %v1003_v27, %v307_v51  ;;  %v681_v18 = vmul.f32 %v1072_v6, %v461_v0  ;;  %v308_v19 = vunpack.c.l.bf16 %v1079_v10  ;;  %v287_v0 = vld [vmem:[%s1534_s5 + $0x18] sm:$0xff] }
  0x24   :  { %v447_v11 = vadd.f32 %v439_v63, %v416_v62  ;;  %v1093_v20 = vstv %s846_s18  ;;  %v355_v21 = vadd.f32 %v347_v8, %v324_v7  ;;  %v400_v23 = vunpack.c.h.bf16 %v1027_v39  ;;  %v1139_v8 = vld [vmem:[%s1533_s4 + $0x68] sm:$0xff] }
  0x25   :  { %v671_v17 = vadd.f32 %v663_v5, %v653_v4  ;;  %v501_v28 = vmul.f32 %v1083_v14, %v492_v13  ;;  %v523_v29 = vunpack.c.l.bf16 %v1088_v15  ;;  %v1104_v30 = vstv %s835_s22 }
  0x26   :  { %801 = vmatmul.mubr.msk.bf16.gmra.mrb[4].mxu0 %vm142_vm1, %v873_v22  ;;  %804 = vmatmul.mubr.msk.bf16.gmra.mrb[4].mxu1 %vm142_vm1, %v873_v22  ;;  %v378_v22 = vmul.f32 %v1022_v38, %v369_v9  ;;  %v478_v26 = vadd.f32 %v470_v12, %v447_v11  ;;  %v600_v32 = vadd.f32 %v592_v16, %v285_v1  ;;  %v309_v35 = vunpack.c.h.bf16 %v1079_v10 }
  0x27   :  { %v610_v33 = vmul.f32 %v1018_v34, %v338_v61  ;;  %v689_v36 = vadd.f32 %v681_v18, %v671_v17  ;;  %v699_v37 = vmul.f32 %v1093_v20, %v492_v13  ;;  %v317_v39 = vmul.f32 %v996_v25, %v308_v19 }
  0x28   :  { %v339_v40 = vunpack.c.l.bf16 %v1100_v24  ;;  %v1111_v41 = vstv %s847_s23  ;;  %v386_v43 = vadd.f32 %v378_v22, %v355_v21  ;;  %v409_v44 = vmul.f32 %v1034_v46, %v400_v23 }
  0x29   :  { %v431_v45 = vunpack.c.h.bf16 %v1039_v47  ;;  %v509_v51 = vadd.f32 %v501_v28, %v478_v26  ;;  %v532_v52 = vmul.f32 %v1104_v30, %v523_v29  ;;  %v593_v53 = vmul.f32 %v1003_v27, %v308_v19  ;;  %v1155_v26 = vld [vmem:[%s1533_s4 + $0x88] sm:$0xff] }
  0x2a   :  { %v618_v54 = vadd.f32 %v610_v33, %v600_v32  ;;  %v628_v57 = vmul.f32 %v1030_v42, %v369_v9  ;;  %v318_v58 = vmul.f32 %v996_v25, %v309_v35  ;;  %v340_v47 = vunpack.c.h.bf16 %v1100_v24 }
  0x2b   :  { %v717_v60 = vmul.f32 %v1111_v41, %v523_v29  ;;  %v325_v61 = vadd.f32 %v317_v39, %v286_v48  ;;  %v348_v62 = vmul.f32 %v1010_v31, %v339_v40  ;;  %v370_v63 = vunpack.c.l.bf16 %v1121_v49 }
  0x2c   :  { %v707_v1 = vadd.f32 %v699_v37, %v689_v36  ;;  %v417_v4 = vadd.f32 %v409_v44, %v386_v43  ;;  %v440_v5 = vmul.f32 %v1047_v55, %v431_v45  ;;  %v462_v7 = vunpack.c.h.bf16 %v1052_v56  ;;  %v1167_v43 = vld [vmem:[%s1533_s4 + $0x10] sm:$0xff] }
  0x2d   :  { %v493_v9 = vunpack.c.h.bf16 %v1069_v3  ;;  %v646_v10 = vmul.f32 %v1042_v50, %v400_v23  ;;  %v601_v11 = vadd.f32 %v593_v53, %v286_v48  ;;  %v611_v12 = vmul.f32 %v1018_v34, %v339_v40 }
  0x2e   :  { %v636_v13 = vadd.f32 %v628_v57, %v618_v54  ;;  %v326_v16 = vadd.f32 %v318_v58, %v287_v0  ;;  %v349_v17 = vmul.f32 %v1010_v31, %v340_v47  ;;  %v371_v18 = vunpack.c.h.bf16 %v1121_v49 }
  0x2f   :  { %v1146_v19 = vadd.f32 %v532_v52, %v509_v51  ;;  %v356_v56 = vadd.f32 %v348_v62, %v325_v61  ;;  %v379_v21 = vmul.f32 %v1022_v38, %v370_v63  ;;  %v401_v22 = vunpack.c.l.bf16 %v1139_v8  ;;  %v1176_v52 = vld [vmem:[%s1533_s4 + $0xa8] sm:$0xff] }
  0x30   :  { %v448_v24 = vadd.f32 %v440_v5, %v417_v4  ;;  %v471_v3 = vmul.f32 %v1064_v2, %v462_v7  ;;  %v524_v23 = vunpack.c.h.bf16 %v1088_v15  ;;  %v594_v28 = vmul.f32 %v1003_v27, %v309_v35  ;;  %v1187_v5 = vld [vmem:[%s1533_s4 + $0x30] sm:$0xff] }
  0x31   :  { %1539 = vst [vmem:[#allocation6_spill] sm:$0xff] %v1146_v19  ;;  %v1158_v29 = vadd.f32 %v717_v60, %v707_v1  ;;  %v664_v32 = vmul.f32 %v1055_v59, %v431_v45  ;;  %v619_v33 = vadd.f32 %v611_v12, %v601_v11  ;;  %v629_v36 = vmul.f32 %v1030_v42, %v370_v63  ;;  %v1196_v12 = vld [vmem:[%s1533_s4 + $0xc8] sm:$0xff] }
  0x32   :  { %v654_v37 = vadd.f32 %v646_v10, %v636_v13  ;;  %v357_v39 = vadd.f32 %v349_v17, %v326_v16  ;;  %v380_v40 = vmul.f32 %v1022_v38, %v371_v18  ;;  %v402_v15 = vunpack.c.h.bf16 %v1139_v8  ;;  %v1201_v13 = vld [vmem:[%s1533_s4 + $0xe8] sm:$0xff] }
  0x33   :  { %1540 = vst [vmem:[#allocation7_spill] sm:$0xff] %v1158_v29  ;;  %v502_v35 = vmul.f32 %v1083_v14, %v493_v9  ;;  %v387_v44 = vadd.f32 %v379_v21, %v356_v56  ;;  %v410_v48 = vmul.f32 %v1034_v46, %v401_v22  ;;  %v432_v45 = vunpack.c.l.bf16 %v1155_v26 }
  0x34   :  { %v479_v49 = vadd.f32 %v471_v3, %v448_v24  ;;  %v533_v51 = vmul.f32 %v1104_v30, %v524_v23  ;;  %v602_v53 = vadd.f32 %v594_v28, %v287_v0  ;;  %v612_v54 = vmul.f32 %v1018_v34, %v340_v47  ;;  %v288_v28 = vld [vmem:[%s1534_s5 + $0x20] sm:$0xff] }
  0x35   :  { %v682_v57 = vmul.f32 %v1072_v6, %v462_v7  ;;  %v637_v58 = vadd.f32 %v629_v36, %v619_v33  ;;  %v647_v60 = vmul.f32 %v1042_v50, %v401_v22  ;;  %v310_v61 = vunpack.c.l.bf16 %v1167_v43 }
  0x36   :  { %v672_v62 = vadd.f32 %v664_v32, %v654_v37  ;;  %v388_v63 = vadd.f32 %v380_v40, %v357_v39  ;;  %v411_v1 = vmul.f32 %v1034_v46, %v402_v15  ;;  %v433_v4 = vunpack.c.h.bf16 %v1155_v26 }
  0x37   :  { %v700_v47 = vmul.f32 %v1093_v20, %v493_v9  ;;  %v418_v0 = vadd.f32 %v410_v48, %v387_v44  ;;  %v441_v7 = vmul.f32 %v1047_v55, %v432_v45  ;;  %v463_v8 = vunpack.c.l.bf16 %v1176_v52 }
  0x38   :  { %v510_v10 = vadd.f32 %v502_v35, %v479_v49  ;;  %v718_v11 = vmul.f32 %v1111_v41, %v524_v23  ;;  %v620_v16 = vadd.f32 %v612_v54, %v602_v53  ;;  %v630_v9 = vmul.f32 %v1030_v42, %v371_v18  ;;  %v1217_v18 = vld [vmem:[%s1533_s4 + $0x50] sm:$0xff] }
  0x39   :  { %v655_v17 = vadd.f32 %v647_v60, %v637_v58  ;;  %v665_v56 = vmul.f32 %v1055_v59, %v432_v45  ;;  %v319_v21 = vmul.f32 %v996_v25, %v310_v61  ;;  %v341_v22 = vunpack.c.l.bf16 %v1187_v5  ;;  %v1235_v58 = vld [vmem:[%s1533_s4 + $0x70] sm:$0xff] }
  0x3a   :  { %v690_v24 = vadd.f32 %v682_v57, %v672_v62  ;;  %v419_v3 = vadd.f32 %v411_v1, %v388_v63  ;;  %v442_v23 = vmul.f32 %v1047_v55, %v433_v4  ;;  %v464_v26 = vunpack.c.h.bf16 %v1176_v52  ;;  %v1245_v1 = vld [vmem:[%s1533_s4 + $0x90] sm:$0xff] }
  0x3b   :  { %v449_v32 = vadd.f32 %v441_v7, %v418_v0  ;;  %v472_v33 = vmul.f32 %v1064_v2, %v463_v8  ;;  %v494_v36 = vunpack.c.l.bf16 %v1196_v12  ;;  %v525_v37 = vunpack.c.l.bf16 %v1201_v13 }
  0x3c   :  { %v1222_v39 = vadd.f32 %v533_v51, %v510_v10  ;;  %v683_v40 = vmul.f32 %v1072_v6, %v463_v8  ;;  %v638_v35 = vadd.f32 %v630_v9, %v620_v16  ;;  %v648_v44 = vmul.f32 %v1042_v50, %v402_v15  ;;  %v1255_v10 = vld [vmem:[%s1533_s4 + $0xb0] sm:$0xff] }
  0x3d   :  { %v673_v48 = vadd.f32 %v665_v56, %v655_v17  ;;  %v327_v45 = vadd.f32 %v319_v21, %v288_v28  ;;  %v350_v49 = vmul.f32 %v1010_v31, %v341_v22  ;;  %v372_v52 = vunpack.c.l.bf16 %v1217_v18  ;;  %v1262_v17 = vld [vmem:[%s1533_s4 + $0xd0] sm:$0xff] }
  0x3e   :  { %1541 = vst [vmem:[#allocation8_spill] sm:$0xff] %v1222_v39  ;;  %v708_v53 = vadd.f32 %v700_v47, %v690_v24  ;;  %v450_v54 = vadd.f32 %v442_v23, %v419_v3  ;;  %v473_v57 = vmul.f32 %v1064_v2, %v464_v26  ;;  %v495_v51 = vunpack.c.h.bf16 %v1196_v12 }
  0x3f   :  { %v480_v15 = vadd.f32 %v472_v33, %v449_v32  ;;  %v503_v60 = vmul.f32 %v1083_v14, %v494_v36  ;;  %v1239_v62 = vmul.f32 %v1104_v30, %v525_v37  ;;  %v526_v63 = vunpack.c.h.bf16 %v1201_v13 }
  0x40   :  { %v701_v47 = vmul.f32 %v1093_v20, %v494_v36  ;;  %v1249_v0 = vmul.f32 %v1111_v41, %v525_v37  ;;  %v656_v7 = vadd.f32 %v648_v44, %v638_v35  ;;  %v666_v8 = vmul.f32 %v1055_v59, %v433_v4  ;;  %v1267_v4 = vld [vmem:[%s1533_s4 + $0xf0] sm:$0xff]  ;;  %v305_v44 = vld [vmem:[%s1533_s4 + $0x18] sm:$0xff] }
  0x41   :  { %v691_v12 = vadd.f32 %v683_v40, %v673_v48  ;;  %v358_v13 = vadd.f32 %v350_v49, %v327_v45  ;;  %v381_v16 = vmul.f32 %v1022_v38, %v372_v52  ;;  %v403_v9 = vunpack.c.l.bf16 %v1235_v58 }
  0x42   :  { %v1269_v56 = vadd.f32 %v718_v11, %v708_v53  ;;  %v481_v21 = vadd.f32 %v473_v57, %v450_v54  ;;  %v504_v24 = vmul.f32 %v1083_v14, %v495_v51  ;;  %v434_v3 = vunpack.c.l.bf16 %v1245_v1 }
  0x43   :  { %v1273_v23 = vadd.f32 %v503_v60, %v480_v15  ;;  %v1276_v32 = vmul.f32 %v1104_v30, %v526_v63  ;;  %v465_v33 = vunpack.c.l.bf16 %v1255_v10  ;;  %v595_v36 = vmul.f32 %v1003_v27, %v310_v61 }
  0x44   :  { %1542 = vst [vmem:[#allocation9_spill] sm:$0xff] %v1269_v56  ;;  %v674_v37 = vadd.f32 %v666_v8, %v656_v7  ;;  %v684_v11 = vmul.f32 %v1072_v6, %v464_v26  ;;  %v496_v40 = vunpack.c.l.bf16 %v1262_v17  ;;  %v1538_v35 = vunpack.c.l.bf16 %v1267_v4 }
  0x45   :  { %1543 = vst [vmem:[#allocation10_spill] sm:$0xff] %v1276_v32  ;;  %v1288_v48 = vadd.f32 %v701_v47, %v691_v12  ;;  %v389_v45 = vadd.f32 %v381_v16, %v358_v13  ;;  %v412_v49 = vmul.f32 %v1034_v46, %v403_v9  ;;  %v311_v53 = vunpack.c.h.bf16 %v1167_v43  ;;  %v809_v43 = vld [vmem:[%s1533_s4 + $0x38] sm:$0xff] }
  0x46   :  { %v1292_v54 = vadd.f32 %v504_v24, %v481_v21  ;;  %v1295_v61 = vmul.f32 %v1093_v20, %v495_v51  ;;  %v1298_v26 = vmul.f32 %v1111_v41, %v526_v63  ;;  %v443_v57 = vmul.f32 %v1047_v55, %v434_v3 }
  0x47   :  { %v1302_v15 = vmul.f32 %v1064_v2, %v465_v33  ;;  %v603_v60 = vadd.f32 %v595_v36, %v288_v28  ;;  %v613_v47 = vmul.f32 %v1018_v34, %v341_v22  ;;  %v312_v7 = vunpack.c.l.bf16 %v305_v44  ;;  %v289_v36 = vld [vmem:[%s1534_s5 + $0x28] sm:$0xff] }
  0x48   :  { %1544 = vst [vmem:[#allocation11_spill] sm:$0xff] %v1292_v54  ;;  %1545 = vst [vmem:[#allocation12_spill] sm:$0xff] %v1298_v26  ;;  %v1310_v51 = vadd.f32 %v684_v11, %v674_v37  ;;  %v1313_v63 = vmul.f32 %v1083_v14, %v496_v40  ;;  %v1318_v8 = vmul.f32 %v1104_v30, %v1538_v35  ;;  %v313_v28 = vunpack.c.h.bf16 %v305_v44 }
  0x49   :  { %v420_v12 = vadd.f32 %v412_v49, %v389_v45  ;;  %v631_v13 = vmul.f32 %v1030_v42, %v372_v52  ;;  %v320_v22 = vmul.f32 %v996_v25, %v311_v53  ;;  %v342_v16 = vunpack.c.h.bf16 %v1187_v5  ;;  %v814_v5 = vld [vmem:[%s1533_s4 + $0x58] sm:$0xff]  ;;  %v290_v49 = vld [vmem:[%s1534_s5 + $0x30] sm:$0xff] }
  0x4a   :  { %1546 = vst [vmem:[#allocation13_spill] sm:$0xff] %v1318_v8  ;;  %v1324_v21 = vmul.f32 %v1042_v50, %v403_v9  ;;  %v1327_v24 = vmul.f32 %v1055_v59, %v434_v3  ;;  %v596_v37 = vmul.f32 %v1003_v27, %v311_v53  ;;  %v343_v11 = vunpack.c.l.bf16 %v809_v43 }
  0x4b   :  { %v621_v44 = vadd.f32 %v613_v47, %v603_v60  ;;  %v1334_v52 = vmul.f32 %v1072_v6, %v465_v33  ;;  %v321_v45 = vmul.f32 %v996_v25, %v312_v7  ;;  %v597_v9 = vmul.f32 %v1003_v27, %v312_v7 }
  0x4c   :  { %v1342_v3 = vmul.f32 %v1093_v20, %v496_v40  ;;  %v322_v53 = vmul.f32 %v996_v25, %v313_v28  ;;  %v344_v60 = vunpack.c.h.bf16 %v809_v43  ;;  %v598_v33 = vmul.f32 %v1003_v27, %v313_v28  ;;  %v291_v40 = vld [vmem:[%s1534_s5 + $0x38] sm:$0xff] }
  0x4d   :  { %v451_v47 = vadd.f32 %v443_v57, %v420_v12  ;;  %v328_v35 = vadd.f32 %v320_v22, %v289_v36  ;;  %v351_v56 = vmul.f32 %v1010_v31, %v342_v16  ;;  %v373_v39 = vunpack.c.h.bf16 %v1217_v18  ;;  %v819_v27 = vld [vmem:[%s1533_s4 + $0x78] sm:$0xff] }
  0x4e   :  { %v604_v7 = vadd.f32 %v596_v37, %v289_v36  ;;  %v614_v29 = vmul.f32 %v1018_v34, %v342_v16  ;;  %v352_v19 = vmul.f32 %v1010_v31, %v343_v11  ;;  %v374_v8 = vunpack.c.l.bf16 %v814_v5 }
  0x4f   :  { %v329_v25 = vadd.f32 %v321_v45, %v290_v49  ;;  %v605_v57 = vadd.f32 %v597_v9, %v290_v49  ;;  %v615_v43 = vmul.f32 %v1018_v34, %v343_v11  ;;  %v375_v28 = vunpack.c.h.bf16 %v814_v5 }
  0x50   :  { %v330_v18 = vadd.f32 %v322_v53, %v291_v40  ;;  %v353_v12 = vmul.f32 %v1010_v31, %v344_v60  ;;  %v606_v22 = vadd.f32 %v598_v33, %v291_v40  ;;  %v616_v36 = vmul.f32 %v1018_v34, %v344_v60  ;;  %v824_v31 = vld [vmem:[%s1533_s4 + $0x98] sm:$0xff] }
  0x51   :  { %v639_v37 = vadd.f32 %v631_v13, %v621_v44  ;;  %v359_v16 = vadd.f32 %v351_v56, %v328_v35  ;;  %v382_v26 = vmul.f32 %v1022_v38, %v373_v39  ;;  %v404_v45 = vunpack.c.h.bf16 %v1235_v58 }
  0x52   :  { %v622_v32 = vadd.f32 %v614_v29, %v604_v7  ;;  %v632_v54 = vmul.f32 %v1030_v42, %v373_v39  ;;  %v383_v9 = vmul.f32 %v1022_v38, %v374_v8  ;;  %v405_v49 = vunpack.c.l.bf16 %v819_v27 }
  0x53   :  { %v360_v11 = vadd.f32 %v352_v19, %v329_v25  ;;  %v623_v5 = vadd.f32 %v615_v43, %v605_v57  ;;  %v633_v34 = vmul.f32 %v1030_v42, %v374_v8  ;;  %v406_v13 = vunpack.c.h.bf16 %v819_v27 }
  0x54   :  { %v361_v56 = vadd.f32 %v353_v12, %v330_v18  ;;  %v384_v35 = vmul.f32 %v1022_v38, %v375_v28  ;;  %v624_v44 = vadd.f32 %v616_v36, %v606_v22  ;;  %v634_v29 = vmul.f32 %v1030_v42, %v375_v28  ;;  %v829_v38 = vld [vmem:[%s1533_s4 + $0xb8] sm:$0xff] }
  0x55   :  { %v1373_v39 = vadd.f32 %v1302_v15, %v451_v47  ;;  %v390_v58 = vadd.f32 %v382_v26, %v359_v16  ;;  %v413_v19 = vmul.f32 %v1034_v46, %v404_v45  ;;  %v435_v53 = vunpack.c.h.bf16 %v1245_v1 }
  0x56   :  { %v640_v60 = vadd.f32 %v632_v54, %v622_v32  ;;  %v650_v33 = vmul.f32 %v1042_v50, %v404_v45  ;;  %v414_v8 = vmul.f32 %v1034_v46, %v405_v49  ;;  %v436_v40 = vunpack.c.l.bf16 %v824_v31 }
  0x57   :  { %v391_v7 = vadd.f32 %v383_v9, %v360_v11  ;;  %v641_v42 = vadd.f32 %v633_v34, %v623_v5  ;;  %v651_v15 = vmul.f32 %v1042_v50, %v405_v49  ;;  %v437_v47 = vunpack.c.h.bf16 %v824_v31 }
  0x58   :  { %v392_v26 = vadd.f32 %v384_v35, %v361_v56  ;;  %v415_v25 = vmul.f32 %v1034_v46, %v406_v13  ;;  %v642_v27 = vadd.f32 %v634_v29, %v624_v44  ;;  %v652_v1 = vmul.f32 %v1042_v50, %v406_v13  ;;  %v834_v46 = vld [vmem:[%s1533_s4 + $0xd8] sm:$0xff] }
  0x59   :  { %v657_v32 = vadd.f32 %v1324_v21, %v639_v37  ;;  %v444_v54 = vmul.f32 %v1047_v55, %v435_v53  ;;  %v466_v57 = vunpack.c.h.bf16 %v1255_v10  ;;  %v668_v43 = vmul.f32 %v1055_v59, %v435_v53 }
  0x5a   :  { %v421_v28 = vadd.f32 %v413_v19, %v390_v58  ;;  %v658_v18 = vadd.f32 %v650_v33, %v640_v60  ;;  %v445_v12 = vmul.f32 %v1047_v55, %v436_v40  ;;  %v467_v22 = vunpack.c.l.bf16 %v829_v38 }
  0x5b   :  { %v422_v36 = vadd.f32 %v414_v8, %v391_v7  ;;  %v659_v16 = vadd.f32 %v651_v15, %v641_v42  ;;  %v669_v50 = vmul.f32 %v1055_v59, %v436_v40  ;;  %v446_v21 = vmul.f32 %v1047_v55, %v437_v47  ;;  %v839_v55 = vld [vmem:[%s1533_s4 + $0xf8] sm:$0xff] }
  0x5c   :  { %v423_v37 = vadd.f32 %v415_v25, %v392_v26  ;;  %v468_v45 = vunpack.c.h.bf16 %v829_v38  ;;  %v660_v10 = vadd.f32 %v652_v1, %v642_v27  ;;  %v670_v9 = vmul.f32 %v1055_v59, %v437_v47 }
  0x5d   :  { %v675_v49 = vadd.f32 %v1327_v24, %v657_v32  ;;  %v475_v11 = vmul.f32 %v1064_v2, %v466_v57  ;;  %v497_v31 = vunpack.c.h.bf16 %v1262_v17  ;;  %v686_v5 = vmul.f32 %v1072_v6, %v466_v57 }
  0x5e   :  { %v452_v34 = vadd.f32 %v444_v54, %v421_v28  ;;  %v676_v13 = vadd.f32 %v668_v43, %v658_v18  ;;  %v476_v56 = vmul.f32 %v1064_v2, %v467_v22  ;;  %v498_v35 = vunpack.c.l.bf16 %v834_v46 }
  0x5f   :  { %v453_v44 = vadd.f32 %v445_v12, %v422_v36  ;;  %v677_v29 = vadd.f32 %v669_v50, %v659_v16  ;;  %v687_v59 = vmul.f32 %v1072_v6, %v467_v22  ;;  %v499_v24 = vunpack.c.h.bf16 %v834_v46 }
  0x60   :  { %v454_v58 = vadd.f32 %v446_v21, %v423_v37  ;;  %v477_v19 = vmul.f32 %v1064_v2, %v468_v45  ;;  %v678_v17 = vadd.f32 %v670_v9, %v660_v10  ;;  %v688_v53 = vmul.f32 %v1072_v6, %v468_v45  ;;  %v1548_v21 = vld [vmem:[#allocation11_spill] sm:$0xff]  ;;  %v1549_v37 = vld [vmem:[#allocation10_spill] sm:$0xff]  ;;  %v1550_v10 = vld [vmem:[#allocation12_spill] sm:$0xff] }
  0x61   :  { %v693_v60 = vadd.f32 %v1334_v52, %v675_v49  ;;  %v506_v33 = vmul.f32 %v1083_v14, %v497_v31  ;;  %v528_v8 = vunpack.c.h.bf16 %v1267_v4  ;;  %v704_v40 = vmul.f32 %v1093_v20, %v497_v31  ;;  %v1551_v49 = vld [vmem:[#allocation13_spill] sm:$0xff] }
  0x62   :  { %v483_v7 = vadd.f32 %v475_v11, %v452_v34  ;;  %v694_v38 = vadd.f32 %v686_v5, %v676_v13  ;;  %v507_v42 = vmul.f32 %v1083_v14, %v498_v35  ;;  %v529_v15 = vunpack.c.l.bf16 %v839_v55  ;;  %v1554_v13 = vld [vmem:[#allocation8_spill] sm:$0xff] }
  0x63   :  { %v484_v47 = vadd.f32 %v476_v56, %v453_v44  ;;  %v695_v26 = vadd.f32 %v687_v59, %v677_v29  ;;  %v705_v2 = vmul.f32 %v1093_v20, %v498_v35  ;;  %v530_v25 = vunpack.c.h.bf16 %v839_v55  ;;  %v1555_v35 = vld [vmem:[#allocation9_spill] sm:$0xff] }
  0x64   :  { %v485_v27 = vadd.f32 %v477_v19, %v454_v58  ;;  %v508_v6 = vmul.f32 %v1083_v14, %v499_v24  ;;  %v696_v52 = vadd.f32 %v688_v53, %v678_v17  ;;  %v706_v1 = vmul.f32 %v1093_v20, %v499_v24 }
  0x65   :  { %v710_v32 = vadd.f32 %v1295_v61, %v1310_v51  ;;  %v513_v54 = vadd.f32 %v1313_v63, %v1373_v39  ;;  %v1547_v57 = vunpack.c.l.bf16 %v1267_v4  ;;  %v537_v28 = vmul.f32 %v1104_v30, %v528_v8 }
  0x66   :  { %v711_v18 = vadd.f32 %v1342_v3, %v693_v60  ;;  %v514_v12 = vadd.f32 %v506_v33, %v483_v7  ;;  %v712_v22 = vadd.f32 %v704_v40, %v694_v38  ;;  %v722_v14 = vmul.f32 %v1111_v41, %v528_v8 }
  0x67   :  { %v721_v43 = vmul.f32 %v1111_v41, %v1547_v57  ;;  %v515_v20 = vadd.f32 %v507_v42, %v484_v47  ;;  %v538_v46 = vmul.f32 %v1104_v30, %v529_v15  ;;  %v713_v61 = vadd.f32 %v705_v2, %v695_v26 }
  0x68   :  { %v723_v51 = vmul.f32 %v1111_v41, %v529_v15  ;;  %v516_v63 = vadd.f32 %v508_v6, %v485_v27  ;;  %v539_v4 = vmul.f32 %v1104_v30, %v530_v25  ;;  %v714_v39 = vadd.f32 %v706_v1, %v696_v52 }
  0x69   :  { %v724_v16 = vmul.f32 %v1111_v41, %v530_v25  ;;  %v1431_v3 = vadd.f32 %v1239_v62, %v1273_v23  ;;  %v1435_v50 = vadd.f32 %v1249_v0, %v1288_v48  ;;  %v1439_v45 = vadd.f32 %v1549_v37, %v1548_v21  ;;  %v1552_v23 = vld [vmem:[#allocation6_spill] sm:$0xff]  ;;  %v1553_v0 = vld [vmem:[#allocation7_spill] sm:$0xff]  ;;  %v294_v21 = vld [vmem:[%s1535_s6 + $0x10] sm:$0xff] }
  0x6a   :  { %v1442_v9 = vadd.f32 %v1550_v10, %v710_v32  ;;  %v1445_v30 = vadd.f32 %v1551_v49, %v513_v54  ;;  %v1447_v11 = vadd.f32 %v721_v43, %v711_v18  ;;  %v1449_v41 = vadd.f32 %v537_v28, %v514_v12 }
  0x6b   :  { %v1451_v62 = vadd.f32 %v722_v14, %v712_v22  ;;  %v548_v31 = vmax.f32 %v1552_v23, 0.0  ;;  %v733_v48 = vmax.f32 %v1553_v0, 0.0  ;;  %v1455_v5 = vadd.f32 %v538_v46, %v515_v20  ;;  %v292_v14 = vld [vmem:[%s1535_s6] sm:$0xff] }
  0x6c   :  { %v1457_v34 = vadd.f32 %v723_v51, %v713_v61  ;;  %v549_v56 = vmax.f32 %v1554_v13, 0.0  ;;  %v734_v44 = vmax.f32 %v1555_v35, 0.0  ;;  %v1461_v55 = vadd.f32 %v539_v4, %v516_v63  ;;  %v293_v4 = vld [vmem:[%s1535_s6 + $0x8] sm:$0xff] }
  0x6d   :  { %v1463_v29 = vadd.f32 %v724_v16, %v714_v39  ;;  %v550_v24 = vmax.f32 %v1431_v3, 0.0  ;;  %v735_v58 = vmax.f32 %v1435_v50, 0.0  ;;  %v551_v19 = vmax.f32 %v1439_v45, 0.0 }
  0x6e   :  { %v736_v17 = vmax.f32 %v1442_v9, 0.0  ;;  %v552_v8 = vmax.f32 %v1445_v30, 0.0  ;;  %v737_v40 = vmax.f32 %v1447_v11, 0.0  ;;  %v553_v7 = vmax.f32 %v1449_v41, 0.0  ;;  %v298_v11 = vld [vmem:[%s1535_s6 + $0x30] sm:$0xff] }
  0x6f   :  { %v738_v38 = vmax.f32 %v1451_v62, 0.0  ;;  %v554_v2 = vmax.f32 %v1455_v5, 0.0  ;;  %v739_v25 = vmax.f32 %v1457_v34, 0.0  ;;  %v555_v32 = vmax.f32 %v1461_v55, 0.0 }
  0x70   :  { %v740_v54 = vmax.f32 %v1463_v29, 0.0 }
  0x94   :  { %v65_v36 = vpop.permute.xlu0 %64  ;;  %v1469_v53 = vpop.permute.xlu1 %74 }
  0x98   :  { %v70_v59 = vpop.permute.xlu0 %69  ;;  %v80_v0 = vpop.permute.xlu1 %79 }
  0xf1   :  { %v196_v60 = vpop.f32.mrb[0].mxu0  ;;  %v249_v33 = vpop.f32.mrb[0].mxu1 }
  0xf2   :  { %v197_v42 = vadd.f32 %v196_v60, %v65_v36  ;;  %v250_v15 = vadd.f32 %v249_v33, %v65_v36  ;;  %v198_v47 = vpop.f32.mrb[1].mxu0  ;;  %v251_v26 = vpop.f32.mrb[1].mxu1 }
  0xf3   :  { %v199_v27 = vadd.f32 %v198_v47, %v65_v36  ;;  %v252_v6 = vadd.f32 %v251_v26, %v65_v36  ;;  %v200_v52 = vpop.f32.mrb[2].mxu0  ;;  %v253_v1 = vpop.f32.mrb[2].mxu1 }
  0xf4   :  { %v268_v57 = vmax.f32 %v197_v42, 0.0  ;;  %v270_v43 = vmax.f32 %v250_v15, 0.0  ;;  %v201_v28 = vadd.f32 %v200_v52, %v70_v59  ;;  %v254_v18 = vadd.f32 %v253_v1, %v70_v59  ;;  %v202_v12 = vpop.f32.mrb[3].mxu0  ;;  %v255_v22 = vpop.f32.mrb[3].mxu1 }
  0xf5   :  { %v269_v20 = vmax.f32 %v199_v27, 0.0  ;;  %v271_v46 = vmax.f32 %v252_v6, 0.0  ;;  %v203_v61 = vadd.f32 %v202_v12, %v70_v59  ;;  %v256_v36 = vadd.f32 %v255_v22, %v70_v59 }
  0xf6   :  { %v556_v51 = vadd.f32 %v548_v31, %v268_v57  ;;  %v741_v63 = vadd.f32 %v733_v48, %v270_v43  ;;  %v272_v39 = vmax.f32 %v201_v28, 0.0  ;;  %v274_v16 = vmax.f32 %v254_v18, 0.0  ;;  %v295_v31 = vld [vmem:[%s1535_s6 + $0x18] sm:$0xff] }
  0xf7   :  { %v557_v3 = vadd.f32 %v549_v56, %v269_v20  ;;  %v742_v50 = vadd.f32 %v734_v44, %v271_v46  ;;  %v273_v37 = vmax.f32 %v203_v61, 0.0  ;;  %v275_v45 = vmax.f32 %v256_v36, 0.0 }
  0xf8   :  { %v564_v10 = vmul.f32 %v556_v51, %v292_v14  ;;  %v749_v9 = vmul.f32 %v741_v63, %v292_v14  ;;  %v558_v49 = vadd.f32 %v550_v24, %v272_v39  ;;  %v743_v23 = vadd.f32 %v735_v58, %v274_v16  ;;  %v296_v14 = vld [vmem:[%s1535_s6 + $0x20] sm:$0xff]  ;;  %v297_v39 = vld [vmem:[%s1535_s6 + $0x28] sm:$0xff] }
  0xf9   :  { %v565_v48 = vmul.f32 %v557_v3, %v293_v4  ;;  %v750_v13 = vmul.f32 %v742_v50, %v293_v4  ;;  %v559_v35 = vadd.f32 %v551_v19, %v273_v37  ;;  %v744_v56 = vadd.f32 %v736_v17, %v275_v45  ;;  %v206_v44 = vpop.f32.mrb[4].mxu0  ;;  %v259_v59 = vpop.f32.mrb[4].mxu1 }
  0xfa   :  { %v566_v60 = vmul.f32 %v558_v49, %v294_v21  ;;  %v751_v33 = vmul.f32 %v743_v23, %v294_v21  ;;  %v207_v42 = vadd.f32 %v206_v44, %v1469_v53  ;;  %v260_v15 = vadd.f32 %v259_v59, %v1469_v53  ;;  %v208_v47 = vpop.f32.mrb[5].mxu0  ;;  %v261_v24 = vpop.f32.mrb[5].mxu1 }
  0xfb   :  { %v572_v58 = vadd.f32 %v565_v48, %v564_v10  ;;  %v757_v26 = vadd.f32 %v750_v13, %v749_v9  ;;  %v567_v27 = vmul.f32 %v559_v35, %v295_v31  ;;  %v752_v6 = vmul.f32 %v744_v56, %v295_v31  ;;  %v210_v52 = vpop.f32.mrb[6].mxu0  ;;  %v263_v1 = vpop.f32.mrb[6].mxu1  ;;  %v299_v48 = vld [vmem:[%s1535_s6 + $0x38] sm:$0xff] }
  0xfc   :  { %v276_v57 = vmax.f32 %v207_v42, 0.0  ;;  %v278_v43 = vmax.f32 %v260_v15, 0.0  ;;  %v209_v19 = vadd.f32 %v208_v47, %v1469_v53  ;;  %v262_v17 = vadd.f32 %v261_v24, %v1469_v53  ;;  %v212_v28 = vpop.f32.mrb[7].mxu0  ;;  %v265_v18 = vpop.f32.mrb[7].mxu1 }
  0xfd   :  { %v573_v12 = vadd.f32 %v572_v58, %v566_v60  ;;  %v758_v22 = vadd.f32 %v757_v26, %v751_v33  ;;  %v211_v20 = vadd.f32 %v210_v52, %v80_v0  ;;  %v264_v46 = vadd.f32 %v263_v1, %v80_v0 }
  0xfe   :  { %v560_v61 = vadd.f32 %v552_v8, %v276_v57  ;;  %v745_v36 = vadd.f32 %v737_v40, %v278_v43  ;;  %v277_v51 = vmax.f32 %v209_v19, 0.0  ;;  %v279_v63 = vmax.f32 %v262_v17, 0.0 }
  0xff   :  { %v574_v4 = vadd.f32 %v573_v12, %v567_v27  ;;  %v759_v53 = vadd.f32 %v758_v22, %v752_v6  ;;  %v280_v16 = vmax.f32 %v211_v20, 0.0  ;;  %v282_v3 = vmax.f32 %v264_v46, 0.0 }
 0x100   :  { %v568_v50 = vmul.f32 %v560_v61, %v296_v14  ;;  %v753_v21 = vmul.f32 %v745_v36, %v296_v14  ;;  %v561_v37 = vadd.f32 %v553_v7, %v277_v51  ;;  %v746_v30 = vadd.f32 %v738_v38, %v279_v63 }
 0x101   :  { %v562_v8 = vadd.f32 %v554_v2, %v280_v16  ;;  %v747_v40 = vadd.f32 %v739_v25, %v282_v3  ;;  %v213_v45 = vadd.f32 %v212_v28, %v80_v0  ;;  %v266_v10 = vadd.f32 %v265_v18, %v80_v0 }
 0x102   :  { %v575_v9 = vadd.f32 %v574_v4, %v568_v50  ;;  %v760_v49 = vadd.f32 %v759_v53, %v753_v21  ;;  %v569_v23 = vmul.f32 %v561_v37, %v297_v39  ;;  %v754_v41 = vmul.f32 %v746_v30, %v297_v39 }
 0x103   :  { %v281_v7 = vmax.f32 %v213_v45, 0.0  ;;  %v283_v31 = vmax.f32 %v266_v10, 0.0  ;;  %v570_v62 = vmul.f32 %v562_v8, %v298_v11  ;;  %v755_v38 = vmul.f32 %v747_v40, %v298_v11 }
 0x104   :  { %v761_v13 = vadd.f32 %v760_v49, %v754_v41  ;;  %v576_v5 = vadd.f32 %v575_v9, %v569_v23  ;;  %v776_v1 = vstv %s1536_s7 }
 0x105   :  { %v563_v34 = vadd.f32 %v555_v32, %v281_v7  ;;  %v748_v2 = vadd.f32 %v740_v54, %v283_v31 }
 0x106   :  { %v762_v25 = vadd.f32 %v761_v13, %v755_v38  ;;  %v577_v0 = vadd.f32 %v576_v5, %v570_v62 }
 0x107   :  { %v756_v35 = vmul.f32 %v748_v2, %v299_v48  ;;  %v571_v56 = vmul.f32 %v563_v34, %v299_v48 }
 0x109   :  { %v763_v44 = vadd.f32 %v762_v25, %v756_v35  ;;  %v578_v59 = vadd.f32 %v577_v0, %v571_v56 }
 0x10b   :  { %764 = vadd.xlane.f32.xlu1 %v763_v44  ;;  %579 = vadd.xlane.f32.xlu0 %v578_v59 }
 0x198   :  { %v765_v60 = vpop.xlane.xlu1 %764  ;;  %v580_v33 = vpop.xlane.xlu0 %579 }
 0x199   :  { %v766_v42 = vrot.slane %v765_v60, 4  ;;  %v581_v15 = vrot.slane %v580_v33, 4 }
 0x19b   :  { %v767_v47 = vadd.f32 %v766_v42, %v765_v60  ;;  %v582_v24 = vadd.f32 %v581_v15, %v580_v33 }
 0x19d   :  { %v768_v58 = vrot.slane %v767_v47, 2  ;;  %v583_v55 = vrot.slane %v582_v24, 2 }
 0x19f   :  { %v769_v32 = vadd.f32 %v768_v58, %v767_v47  ;;  %v584_v26 = vadd.f32 %v583_v55, %v582_v24 }
 0x1a1   :  { %v585_v29 = vrot.slane %v584_v26, 1  ;;  %v770_v54 = vrot.slane %v769_v32, 1 }
 0x1a3   :  { %v586_v27 = vadd.f32 %v585_v29, %v584_v26  ;;  %v771_v6 = vadd.f32 %v770_v54, %v769_v32 }
 0x1a5   :  { %848 = vpush %v586_v27 }
 0x1a6   :  { %850 = vpush %v771_v6 }
 0x1d6   :  { %s849_s6 = spop %848 }
 0x1d7   :  { %v588_v52 = vstv %s849_s6  ;;  %s851_s22 = spop %850 }
 0x1d8   :  { %v773_v57 = vstv %s851_s22 }
 0x1d9   :  { %v775_v43 = vsel %vm774_vm2, %v588_v52, %v773_v57 }
 0x1da   :  { %v777_v19 = vadd.f32 %v776_v1, %v775_v43 }
 0x1dc   :  { %779 = vst.msk [vmem:[%s1537_s8] sm:$0x3] %vm778_vm3, %v777_v19 }
 0x1dd   :  { %784 = vsyncpa [#allocation4], 1 }

</bundles_post_ra>
